<compile_context>
chip_gen: v7x
topology: tpu7x:2x2x1
jax: 0.10.0
libtpu: 0.0.40
codegen_flags: <defaults>
</compile_context>

<pallas_src>
import jax
import jax.numpy as jnp
from jax.experimental import pallas as pl
from jax.experimental.pallas import tpu as pltpu


def _mlp_kernel(x_ref, w1_ref, b1_ref, w2_ref, b2_ref, o_ref):
    # x: [TB, D_in]  w1: [D_in, H]  b1: [1, H]  w2: [H, A_pad]  b2: [1, A_pad]
    # Hoist all parameter loads so the LLO scheduler can co-issue them with
    # the MXU pushes.
    w1 = w1_ref[...]
    b1 = b1_ref[...]
    w2 = w2_ref[...]
    b2 = b2_ref[...]
    x = x_ref[...]

    # Linear 1 + ReLU (MXU matmul, f32 accumulation).
    h = jnp.dot(x, w1, preferred_element_type=jnp.float32) + b1
    h = jnp.maximum(h, 0.0)

    # Linear 2 + Sigmoid (tanh form -> EUP; exact sigmoid, no overflow).
    z = jnp.dot(h, w2, preferred_element_type=jnp.float32) + b2
    o_ref[...] = (0.5 * (jnp.tanh(0.5 * z) + 1.0)).astype(o_ref.dtype)


def rl_agent_forward(state, w1, b1, w2, b2, *, block_b=256):
    """Fused MLP forward: sigmoid(relu(state @ w1 + b1) @ w2 + b2)."""
    B, D = state.shape
    H = w1.shape[1]
    A = w2.shape[1]
    dtype = state.dtype

    # Lane-dense output: pad the action dimension to a multiple of 128 so the
    # kernel's stores are full-lane (no vst.msk partial stores).
    A_pad = ((A + 127) // 128) * 128
    w2_p = jnp.zeros((H, A_pad), w2.dtype).at[:, :A].set(w2)
    b2_p = jnp.zeros((1, A_pad), b2.dtype).at[:, :A].set(b2.reshape(1, A))
    b1_2d = b1.reshape(1, H)

    cost = pl.CostEstimate(
        flops=2 * B * (D * H + H * A_pad),
        transcendentals=B * A_pad,
        bytes_accessed=4 * (B * D + D * H + H + H * A_pad + A_pad + B * A_pad),
    )

    if B <= block_b:
        # Single-block path: no grid at all, everything resident in VMEM.
        out = pl.pallas_call(
            _mlp_kernel,
            out_shape=jax.ShapeDtypeStruct((B, A_pad), dtype),
            in_specs=[pl.BlockSpec(memory_space=pltpu.MemorySpace.VMEM)] * 5,
            out_specs=pl.BlockSpec(memory_space=pltpu.MemorySpace.VMEM),
            cost_estimate=cost,
        )(state, w1, b1_2d, w2_p, b2_p)
    else:
        # Batch-tiled path: amortizes per-step pipeline overhead; weights and
        # biases stay VMEM-resident (constant index_maps).
        tb = block_b
        B_pad = ((B + tb - 1) // tb) * tb
        x = state if B_pad == B else jnp.zeros((B_pad, D), dtype).at[:B].set(state)
        out = pl.pallas_call(
            _mlp_kernel,
            out_shape=jax.ShapeDtypeStruct((B_pad, A_pad), dtype),
            grid=(B_pad // tb,),
            in_specs=[
                pl.BlockSpec((tb, D), lambda i: (i, 0)),
                pl.BlockSpec((D, H), lambda i: (0, 0)),
                pl.BlockSpec((1, H), lambda i: (0, 0)),
                pl.BlockSpec((H, A_pad), lambda i: (0, 0)),
                pl.BlockSpec((1, A_pad), lambda i: (0, 0)),
            ],
            out_specs=pl.BlockSpec((tb, A_pad), lambda i: (i, 0)),
            compiler_params=pltpu.CompilerParams(
                dimension_semantics=("parallel",)),
            cost_estimate=cost,
        )(x, w1, b1_2d, w2_p, b2_p)
        out = out[:B]

    return out[:, :A]


def init_rl_agent_params(key, input_dim, action_dim, hidden=64, dtype=jnp.float32):
    """Deterministic synthetic init (PyTorch-style uniform(-1/sqrt(fan_in), 1/sqrt(fan_in)))."""
    k1, k2, k3, k4 = jax.random.split(key, 4)
    lim1 = 1.0 / jnp.sqrt(jnp.asarray(input_dim, dtype))
    lim2 = 1.0 / jnp.sqrt(jnp.asarray(hidden, dtype))
    w1 = jax.random.uniform(k1, (input_dim, hidden), dtype, -lim1, lim1)
    b1 = jax.random.uniform(k2, (1, hidden), dtype, -lim1, lim1)
    w2 = jax.random.uniform(k3, (hidden, action_dim), dtype, -lim2, lim2)
    b2 = jax.random.uniform(k4, (1, action_dim), dtype, -lim2, lim2)
    return w1, b1, w2, b2


def _reference(state, w1, b1, w2, b2):
    return jax.nn.sigmoid(jnp.maximum(state @ w1 + b1, 0.0) @ w2 + b2)


if __name__ == "__main__":
    key = jax.random.PRNGKey(0)
    k_params, k_state, k_big = jax.random.split(key, 3)

    batch = 8
    input_dim = 16
    action_dim = 4
    hidden = 64

    w1, b1, w2, b2 = init_rl_agent_params(k_params, input_dim, action_dim, hidden)

    # Small batch -> grid-less single-block path.
    state = jax.random.normal(k_state, (batch, input_dim), jnp.float32)
    out = jax.block_until_ready(rl_agent_forward(state, w1, b1, w2, b2))
    ref = _reference(state, w1, b1, w2, b2)
    assert out.shape == (batch, action_dim)
    assert jnp.allclose(out, ref, atol=1e-5, rtol=1e-5)

    # Larger batch -> batch-tiled path (256-row blocks, parallel grid axis).
    big_batch = 512
    state_big = jax.random.normal(k_big, (big_batch, input_dim), jnp.float32)
    out_big = jax.block_until_ready(rl_agent_forward(state_big, w1, b1, w2, b2))
    ref_big = _reference(state_big, w1, b1, w2, b2)
    assert out_big.shape == (big_batch, action_dim)
    assert jnp.allclose(out_big, ref_big, atol=1e-5, rtol=1e-5)

    print("KERNEL_OK")
</pallas_src>

<mosaic_0001>
module attributes {stable_mosaic.version = 11 : i64} {
  func.func @_mlp_kernel(%arg0: memref<8x16xf32, #tpu.memory_space<vmem>>, %arg1: memref<16x64xf32, #tpu.memory_space<vmem>>, %arg2: memref<1x64xf32, #tpu.memory_space<vmem>>, %arg3: memref<64x128xf32, #tpu.memory_space<vmem>>, %arg4: memref<1x128xf32, #tpu.memory_space<vmem>>, %arg5: memref<8x128xf32, #tpu.memory_space<vmem>>) attributes {dimension_semantics = [], scalar_prefetch = 0 : i64, scratch_operands = 0 : i64, tpu.core_type = #tpu.core_type<tc>} {
    %c0 = arith.constant 0 : index
    %c0_0 = arith.constant 0 : index
    %0 = vector.load %arg1[%c0, %c0_0] : memref<16x64xf32, #tpu.memory_space<vmem>>, vector<16x64xf32>
    %c0_1 = arith.constant 0 : index
    %c0_2 = arith.constant 0 : index
    %1 = vector.load %arg2[%c0_1, %c0_2] : memref<1x64xf32, #tpu.memory_space<vmem>>, vector<1x64xf32>
    %c0_3 = arith.constant 0 : index
    %c0_4 = arith.constant 0 : index
    %2 = vector.load %arg3[%c0_3, %c0_4] : memref<64x128xf32, #tpu.memory_space<vmem>>, vector<64x128xf32>
    %c0_5 = arith.constant 0 : index
    %c0_6 = arith.constant 0 : index
    %3 = vector.load %arg4[%c0_5, %c0_6] : memref<1x128xf32, #tpu.memory_space<vmem>>, vector<1x128xf32>
    %c0_7 = arith.constant 0 : index
    %c0_8 = arith.constant 0 : index
    %4 = vector.load %arg0[%c0_7, %c0_8] : memref<8x16xf32, #tpu.memory_space<vmem>>, vector<8x16xf32>
    %cst = arith.constant dense<0.000000e+00> : vector<8x64xf32>
    %5 = tpu.matmul %4, %0, %cst {dimension_numbers = #tpu.dot_dimension_numbers<[1], [0], [0], [1], [0, 0, 1, 1], [], []>} : vector<8x16xf32>, vector<16x64xf32>, vector<8x64xf32> -> vector<8x64xf32>
    %6 = vector.broadcast %1 : vector<1x64xf32> to vector<8x64xf32>
    %7 = arith.addf %5, %6 : vector<8x64xf32>
    %cst_9 = arith.constant 0.000000e+00 : f32
    %8 = vector.broadcast %cst_9 : f32 to vector<8x64xf32>
    %9 = arith.maximumf %7, %8 : vector<8x64xf32>
    %cst_10 = arith.constant dense<0.000000e+00> : vector<8x128xf32>
    %10 = tpu.matmul %9, %2, %cst_10 {dimension_numbers = #tpu.dot_dimension_numbers<[1], [0], [0], [1], [0, 0, 1, 1], [], []>} : vector<8x64xf32>, vector<64x128xf32>, vector<8x128xf32> -> vector<8x128xf32>
    %11 = vector.broadcast %3 : vector<1x128xf32> to vector<8x128xf32>
    %12 = arith.addf %10, %11 : vector<8x128xf32>
    %cst_11 = arith.constant 5.000000e-01 : f32
    %13 = vector.broadcast %cst_11 : f32 to vector<8x128xf32>
    %14 = arith.mulf %13, %12 : vector<8x128xf32>
    %15 = math.tanh %14 : vector<8x128xf32>
    %cst_12 = arith.constant 1.000000e+00 : f32
    %16 = vector.broadcast %cst_12 : f32 to vector<8x128xf32>
    %17 = arith.addf %15, %16 : vector<8x128xf32>
    %cst_13 = arith.constant 5.000000e-01 : f32
    %18 = vector.broadcast %cst_13 : f32 to vector<8x128xf32>
    %19 = arith.mulf %18, %17 : vector<8x128xf32>
    %c0_14 = arith.constant 0 : index
    %c0_15 = arith.constant 0 : index
    %20 = vector.load %arg5[%c0_14, %c0_15] : memref<8x128xf32, #tpu.memory_space<vmem>>, vector<8x128xf32>
    tpu.vector_store %arg5[%c0_14, %c0_15], %19 {strides = array<i32>} : memref<8x128xf32, #tpu.memory_space<vmem>>, vector<8x128xf32>,
    return
  }
}

</mosaic_0001>

<bundles_post_ra>
// kernel: tpu_custom_call.1
= control target key start
LH: loop header
LB: loop body
LE: loop exit
PB: predicated region body
PF: predicated region fallthrough
CT: control target
= control target key end

     0   :  { %10 = vsyncpa [#allocation3], 0  ;;  %s516_s0 = inlined_call_operand.hbm [shape: f32[8,16], index: 0, kind: input, shape index: {}]   ;;  %s517_s1 = inlined_call_operand.hbm [shape: f32[16,64], index: 1, kind: input, shape index: {}]   ;;  %s518_s2 = inlined_call_operand.vmem [shape: f32[1,64], index: 2, kind: input, shape index: {}]   ;;  %s519_s3 = inlined_call_operand.hbm [shape: f32[64,128], index: 3, kind: input, shape index: {}]   ;;  %s520_s4 = inlined_call_operand.vmem [shape: f32[1,128], index: 4, kind: input, shape index: {}]   ;;  %s521_s5 = inlined_call_operand.hbm [shape: f32[8,128], index: 5, kind: output, shape index: {}]  }
   0x1   :  { %11 = vsyncpa [#allocation6], 0 }
   0x2   :  { %12 = vsyncpa [#allocation4], 0  ;;  %s417_s18 = smov [#allocation5]   ;;  %s323_s22 = scalar_lea.hbm %s517_s1, 256 }
   0x3   :  { %s28_s19 = sshll.u32 %s417_s18, 4  ;;  %p324_p0 = scmp.ne.s32.totalorder %s517_s1, %s323_s22  ;;  %s29_s19 = int_to_ptr.vmem [resolvable:$true] %s28_s19 }
   0x4   :  { %p327_p1 = scmp.lt.u32.totalorder %s323_s22, %s517_s1 }
   0x6   :  { %p329_p2 = pnand %p327_p1, %p324_p0 }
   0x8   :  { %332 = shalt.err (!%p329_p2)
}
   0x9   :  { %s333_s27 = scalar_lea.vmem %s29_s19, 256  ;;  %p338_p4 = scmp.lt.s32.totalorder %s29_s19, %s29_s19 }
   0xa   :  { %p334_p3 = scmp.ne.s32.totalorder %s29_s19, %s333_s27  ;;  %p339_p5 = scmp.lt.s32.totalorder %s333_s27, %s333_s27 }
   0xc   :  { %p340_p6 = por %p339_p5, %p338_p4 }
   0xe   :  { %p341_p7 = pnand %p340_p6, %p334_p3 }
  0x10   :  { %344 = shalt.err (!%p341_p7)
}
  0x11   :  { %s418_s28 = smov 128   ;;  %s419_s29 = smov 8  }
  0x12   :  { %34 = dma.hbm_to_vmem [thread:$0]  %s517_s1, 256, %s29_s19, [#allocation6], %s418_s28, %s418_s28, %s419_s29  }
  0x13   :  { %s420_s7 = smov [#allocation2]   ;;  %s421_s9 = smov [#allocation7]  }
  0x14   :  { %s19_s8 = sshll.u32 %s420_s7, 4  ;;  %s42_s10 = sshll.u32 %s421_s9, 4  ;;  %s20_s8 = int_to_ptr.vmem [resolvable:$true] %s19_s8  ;;  %s43_s10 = int_to_ptr.vmem [resolvable:$true] %s42_s10 }
  0x15   :  { %s345_s13 = scalar_lea.hbm %s516_s0, 128 }
  0x16   :  { %p346_p8 = scmp.ne.s32.totalorder %s516_s0, %s345_s13  ;;  %p349_p9 = scmp.lt.u32.totalorder %s345_s13, %s516_s0 }
  0x18   :  { %p351_p10 = pnand %p349_p9, %p346_p8 }
  0x1a   :  { %354 = shalt.err (!%p351_p10)
}
  0x1b   :  { %s355_s1 = scalar_lea.vmem %s20_s8, 128  ;;  %p360_p12 = scmp.lt.s32.totalorder %s20_s8, %s20_s8 }
  0x1c   :  { %p356_p11 = scmp.ne.s32.totalorder %s20_s8, %s355_s1  ;;  %p361_p13 = scmp.lt.s32.totalorder %s355_s1, %s355_s1 }
  0x1e   :  { %p362_p0 = por %p361_p13, %p360_p12 }
  0x20   :  { %p363_p1 = pnand %p362_p0, %p356_p11 }
  0x22   :  { %366 = shalt.err (!%p363_p1)
}
  0x23   :  { %22 = dma.hbm_to_vmem [thread:$0]  %s516_s0, 128, %s20_s8, [#allocation3]  }
  0x24   :  { %s367_s22 = scalar_lea.hbm %s519_s3, 1024 }
  0x25   :  { %p368_p2 = scmp.ne.s32.totalorder %s519_s3, %s367_s22  ;;  %p371_p3 = scmp.lt.u32.totalorder %s367_s22, %s519_s3 }
  0x27   :  { %p373_p4 = pnand %p371_p3, %p368_p2 }
  0x29   :  { %376 = shalt.err (!%p373_p4)
}
  0x2a   :  { %s377_s27 = scalar_lea.vmem %s43_s10, 1024  ;;  %p382_p6 = scmp.lt.s32.totalorder %s43_s10, %s43_s10 }
  0x2b   :  { %p378_p5 = scmp.ne.s32.totalorder %s43_s10, %s377_s27  ;;  %p383_p7 = scmp.lt.s32.totalorder %s377_s27, %s377_s27 }
  0x2d   :  { %p384_p8 = por %p383_p7, %p382_p6 }
  0x2f   :  { %p385_p9 = pnand %p384_p8, %p378_p5 }
  0x31   :  { %388 = shalt.err (!%p385_p9)
}
  0x32   :  { %48 = dma.hbm_to_vmem [thread:$0]  %s519_s3, 1024, %s43_s10, [#allocation6], %s418_s28, %s418_s28, %s419_s29  }
  0x33   :  { %411 = dma.done.wait [#allocation3], 128  }
  0x34   :  { %412 = vsyncadd [#allocation3], 4294967168 }
  0x35   :  { %413 = dma.done.wait [#allocation6], 1280  }
  0x36   :  { %414 = vsyncadd [#allocation6], 4294966016  ;;  %v422_v0 = vmov 0.0|0.0   ;;  %vm423_vm0 = vmmov 0   ;;  %v424_v1 = vmov 0.0   ;;  %v60_v2 = vld [vmem:[#allocation5] sm:$0xff] }
  0x37   :  { %297 = vmatprep.subr.bf16.mxu0 %v422_v0  ;;  %275 = vmatprep.mubr.msk.f32.mxu0 %vm423_vm0, %v424_v1  ;;  %v61_v3 = vld [vmem:[#allocation5 + $0x8] sm:$0xff]  ;;  %v63_v5 = vld [vmem:[#allocation7] sm:$0xff]  ;;  %v64_v6 = vld [vmem:[#allocation7 + $0x8] sm:$0xff]  ;;  %vm79_vm1 = vcmask 130048   ;;  %vm160_vm2 = vcmask 523264   ;;  %s425_s7 = smov [#allocation8]  }
  0x38   :  { %300 = vmatprep.subr.bf16.mxu1 %v422_v0  ;;  %294 = vmatprep.mubr.msk.f32.mxu1 %vm423_vm0, %v424_v1  ;;  %v298_v4 = vpack.c.bf16 %v61_v3, %v60_v2  ;;  %v65_v7 = vld [vmem:[#allocation7 + $0x10] sm:$0xff]  ;;  %v301_v8 = vpack.c.bf16 %v64_v6, %v63_v5  ;;  %v66_v9 = vld [vmem:[#allocation7 + $0x18] sm:$0xff]  ;;  %v72_v10 = vld [vmem:[#allocation2] sm:$0xff]  ;;  %s245_s8 = sshll.u32 %s425_s7, 4  ;;  %s246_s8 = int_to_ptr.vmem [resolvable:$true] %s245_s8 }
  0x39   :  { %v304_v11 = vpack.c.bf16 %v66_v9, %v65_v7  ;;  %v67_v12 = vld [vmem:[#allocation7 + $0x20] sm:$0xff]  ;;  %v68_v13 = vld [vmem:[#allocation7 + $0x28] sm:$0xff]  ;;  %v69_v15 = vld [vmem:[#allocation7 + $0x30] sm:$0xff]  ;;  %p394_p11 = scmp.lt.s32.totalorder %s246_s8, %s246_s8 }
  0x3a   :  { %299 = vmatpush3.bf16.msra.mxu0 %v298_v4  ;;  %302 = vmatpush3.bf16.msra.mxu1 %v301_v8  ;;  %v307_v14 = vpack.c.bf16 %v68_v13, %v67_v12  ;;  %v70_v16 = vld [vmem:[#allocation7 + $0x38] sm:$0xff]  ;;  %v255_v18 = vld [vmem:[%s518_s2] ss:$0 sm:$0xff]  ;;  %s389_s2 = scalar_lea.vmem %s246_s8, 128 }
  0x3b   :  { %303 = vmatprep.subr.bf16.mxu1 %v422_v0  ;;  %v310_v17 = vpack.c.bf16 %v70_v16, %v69_v15  ;;  %v257_v23 = vld [vmem:[%s520_s4] ss:$0 sm:$0xff]  ;;  %p390_p10 = scmp.ne.s32.totalorder %s246_s8, %s389_s2  ;;  %p395_p12 = scmp.lt.s32.totalorder %s389_s2, %s389_s2 }
  0x3d   :  { %276 = vmatmul.mubr.msk.f32.vlgmr.msra.gmra.mrb[0].mxu0 %vm79_vm1, %v72_v10  ;;  %p396_p13 = por %p395_p12, %p394_p11 }
  0x3e   :  { %305 = vmatpush3.bf16.msra.mxu1 %v304_v11 }
  0x3f   :  { %306 = vmatprep.subr.bf16.mxu1 %v422_v0  ;;  %p397_p0 = pnand %p396_p13, %p390_p10 }
  0x42   :  { %308 = vmatpush3.bf16.msra.mxu1 %v307_v14 }
  0x43   :  { %309 = vmatprep.subr.bf16.mxu1 %v422_v0 }
  0x46   :  { %311 = vmatpush3.bf16.msra.mxu1 %v310_v17 }
 0x110   :  { %v149_v19 = vpop.f32.mrb[0].mxu0 }
 0x111   :  { %v150_v20 = vadd.f32 %v255_v18, %v149_v19  ;;  %v277_v21 = vpop.f32.mrb[1].mxu0 }
 0x113   :  { %v153_v22 = vmax.f32 %v150_v20, 0.0 }
 0x115   :  { %295 = vmatmul.mubr.msk.f32.vlgmr.msra.gmra.mrb[0].mxu1 %vm160_vm2, %v153_v22 }
 0x1e8   :  { %v230_v24 = vpop.f32.mrb[0].mxu1 }
 0x1e9   :  { %v231_v25 = vadd.f32 %v257_v23, %v230_v24  ;;  %v296_v26 = vpop.f32.mrb[1].mxu1 }
 0x1eb   :  { %v234_v27 = vmul.f32 0.5, %v231_v25 }
 0x1ed   :  { %321 = vtanh.f32 %v234_v27 }
 0x1f7   :  { %v322_v28 = vpop.eup %321 }
 0x1f8   :  { %v236_v29 = vadd.f32 1.0, %v322_v28 }
 0x1fa   :  { %v237_v30 = vmul.f32 0.5, %v236_v29 }
 0x1fc   :  { %238 = vst [vmem:[#allocation8] sm:$0xff] %v237_v30 }
 0x1fd   :  { %400 = shalt.err (!%p397_p0)
}
 0x1fe   :  { %s401_s10 = scalar_lea.hbm %s521_s5, 128 }
 0x1ff   :  { %p402_p1 = scmp.ne.s32.totalorder %s521_s5, %s401_s10  ;;  %p405_p2 = scmp.lt.u32.totalorder %s401_s10, %s521_s5 }
 0x201   :  { %p407_p3 = pnand %p405_p2, %p402_p1 }
 0x203   :  { %410 = shalt.err (!%p407_p3)
}
 0x204   :  { %248 = dma.vmem_to_hbm [thread:$0]  %s246_s8, 128, %s521_s5, [#allocation4]  }
 0x205   :  { %415 = dma.done.wait [#allocation4], 128  }
 0x206   :  { %416 = vsyncadd [#allocation4], 4294967168 }
 0x207   :  { %252 = vsyncpa [#allocation3], 1 }
 0x208   :  { %253 = vsyncpa [#allocation6], 1 }
 0x209   :  { %254 = vsyncpa [#allocation4], 1 }

</bundles_post_ra>
